<compile_context>
chip_gen: v7x
topology: tpu7x:2x2x1
jax: 0.10.0
libtpu: 0.0.40
codegen_flags: <defaults>
</compile_context>

<pallas_src>
import jax
import jax.numpy as jnp
from jax.experimental import pallas as pl


# ----------------------------------------------------------------------------
# Shared in-kernel GRU math.
#
# w is the stacked weight (K1+K2+M, 4M), b is (1, 4M), both with column layout
# [r | z | i_n | h_n], each block of width M:
#   columns [0 , M )  : W_ir x + W_hr h + (b_ir + b_hr)
#   columns [M , 2M)  : W_iz x + W_hz h + (b_iz + b_hz)
#   columns [2M, 3M)  : W_in x + b_in
#   columns [3M, 4M)  : W_hn h + b_hn
# which is exactly what PyTorch GRUCell needs (n = tanh(i_n + r * h_n)).
# ----------------------------------------------------------------------------
def _gru_gates(x1, x2, h, w, b):
    M = h.shape[1]
    combined = jnp.concatenate([x1, x2, h], axis=1)        # fused concat, in-VMEM
    g = jnp.dot(combined, w, preferred_element_type=jnp.float32) + b
    r = jax.nn.sigmoid(g[:, :M])
    z = jax.nn.sigmoid(g[:, M:2 * M])
    n = jnp.tanh(g[:, 2 * M:3 * M] + r * g[:, 3 * M:])
    return (1.0 - z) * n + z * h


def _gru_step_kernel(h_ref, x1_ref, x2_ref, w_ref, b_ref, out_ref):
    """Single fused GRUCell update: concat + one stacked projection in-kernel."""
    out_ref[...] = _gru_gates(x1_ref[...], x2_ref[...], h_ref[...],
                              w_ref[...], b_ref[...])


def _gru_rollout_kernel(h0_ref, x1_ref, x2_ref, w_ref, b_ref, out_ref):
    """T-step rollout in ONE grid step: whole sequence + weights are
    VMEM-resident, hidden state is carried in vregs, output written once."""
    w = w_ref[...]
    b = b_ref[...]
    T = x1_ref.shape[0]

    def step(t, h):
        return _gru_gates(x1_ref[t], x2_ref[t], h, w, b)

    # T is small and static: fully unroll so the LLO scheduler sees the chain.
    h_final = jax.lax.fori_loop(0, T, step, h0_ref[...], unroll=True)
    out_ref[...] = h_final


# ----------------------------------------------------------------------------
# Wrappers
# ----------------------------------------------------------------------------
def _full_spec(shape):
    return pl.BlockSpec(shape, lambda shape=shape: (0,) * len(shape))


def social_relationship_tracker_forward(social_memory,
                                        sent_messages,        # unused by forward
                                        received_messages,
                                        others_states,
                                        w_packed, b_packed):
    """Single-step forward: new_memory = GRUCell([recv, others], social_memory)."""
    del sent_messages  # not used by the reference forward pass
    B, M = social_memory.shape
    K1 = received_messages.shape[1]
    K2 = others_states.shape[1]

    return pl.pallas_call(
        _gru_step_kernel,
        out_shape=jax.ShapeDtypeStruct((B, M), jnp.float32),
        grid=(),
        in_specs=[
            _full_spec((B, M)),
            _full_spec((B, K1)),
            _full_spec((B, K2)),
            _full_spec((K1 + K2 + M, 4 * M)),
            _full_spec((1, 4 * M)),
        ],
        out_specs=_full_spec((B, M)),
        input_output_aliases={0: 0},   # update social_memory in place
    )(social_memory, received_messages, others_states, w_packed, b_packed)


def social_relationship_tracker_rollout(social_memory,
                                        received_messages_seq,  # (T, B, K1)
                                        others_states_seq,      # (T, B, K2)
                                        w_packed, b_packed):
    """Apply the GRU update over T steps inside one pallas_call / one grid
    step: weights + full sequence are DMA'd once and stay VMEM-resident."""
    T, B, K1 = received_messages_seq.shape
    K2 = others_states_seq.shape[2]
    M = social_memory.shape[1]
    # TODO(synk): for very long rollouts, chunk T (sized against v7x's 64 MiB
    # VMEM) with a grid axis instead of holding the whole sequence resident.

    return pl.pallas_call(
        _gru_rollout_kernel,
        out_shape=jax.ShapeDtypeStruct((B, M), jnp.float32),
        grid=(),
        in_specs=[
            _full_spec((B, M)),
            _full_spec((T, B, K1)),
            _full_spec((T, B, K2)),
            _full_spec((K1 + K2 + M, 4 * M)),
            _full_spec((1, 4 * M)),
        ],
        out_specs=_full_spec((B, M)),
        input_output_aliases={0: 0},   # final memory overwrites h0 buffer
    )(social_memory, received_messages_seq, others_states_seq,
      w_packed, b_packed)


# ----------------------------------------------------------------------------
# Parameter handling (PyTorch layout -> fused kernel layout)
# ----------------------------------------------------------------------------
def init_torch_style_params(key, input_size, memory_dim):
    """PyTorch GRUCell layout: w_ih (3M, K), w_hh (3M, M), b_ih (3M,), b_hh (3M,)."""
    k1, k2, k3, k4 = jax.random.split(key, 4)
    bound = 1.0 / jnp.sqrt(jnp.float32(memory_dim))
    w_ih = jax.random.uniform(k1, (3 * memory_dim, input_size), jnp.float32, -bound, bound)
    w_hh = jax.random.uniform(k2, (3 * memory_dim, memory_dim), jnp.float32, -bound, bound)
    b_ih = jax.random.uniform(k3, (3 * memory_dim,), jnp.float32, -bound, bound)
    b_hh = jax.random.uniform(k4, (3 * memory_dim,), jnp.float32, -bound, bound)
    return w_ih, w_hh, b_ih, b_hh


def pack_gru_params(torch_params):
    """Pack PyTorch GRUCell params into the fused stacked layout.

    Returns (w_packed, b_packed):
      w_packed : (K + M, 4M) rows ordered [received | others | hidden],
                 columns [r | z | i_n | h_n]
      b_packed : (1, 4M)  [b_ir+b_hr | b_iz+b_hz | b_in | b_hn]
    """
    w_ih, w_hh, b_ih, b_hh = torch_params
    M = w_hh.shape[1]
    K = w_ih.shape[1]

    w_ih_r, w_ih_z, w_ih_n = w_ih[:M], w_ih[M:2 * M], w_ih[2 * M:]
    w_hh_r, w_hh_z, w_hh_n = w_hh[:M], w_hh[M:2 * M], w_hh[2 * M:]

    zeros_x = jnp.zeros((K, M), jnp.float32)
    zeros_h = jnp.zeros((M, M), jnp.float32)
    w_x = jnp.concatenate([w_ih_r.T, w_ih_z.T, w_ih_n.T, zeros_x], axis=1)  # (K, 4M)
    w_h = jnp.concatenate([w_hh_r.T, w_hh_z.T, zeros_h, w_hh_n.T], axis=1)  # (M, 4M)
    w_packed = jnp.concatenate([w_x, w_h], axis=0)                          # (K+M, 4M)
    b_packed = jnp.concatenate([b_ih[:M] + b_hh[:M],
                                b_ih[M:2 * M] + b_hh[M:2 * M],
                                b_ih[2 * M:],
                                b_hh[2 * M:]]).reshape(1, 4 * M)
    return w_packed, b_packed


# ----------------------------------------------------------------------------
# Pure-JAX references for correctness checks
# ----------------------------------------------------------------------------
def reference_gru_step(h, received, others, torch_params):
    w_ih, w_hh, b_ih, b_hh = torch_params
    x = jnp.concatenate([received, others], axis=1)
    M = h.shape[1]
    gi = x @ w_ih.T + b_ih
    gh = h @ w_hh.T + b_hh
    r = jax.nn.sigmoid(gi[:, :M] + gh[:, :M])
    z = jax.nn.sigmoid(gi[:, M:2 * M] + gh[:, M:2 * M])
    n = jnp.tanh(gi[:, 2 * M:] + r * gh[:, 2 * M:])
    return (1.0 - z) * n + z * h


def reference_gru_rollout(h0, received_seq, others_seq, torch_params):
    def step(h, xs):
        recv, oth = xs
        return reference_gru_step(h, recv, oth, torch_params), None
    h_final, _ = jax.lax.scan(step, h0, (received_seq, others_seq))
    return h_final


# ----------------------------------------------------------------------------
if __name__ == "__main__":
    # Small shapes consistent with the module
    batch_size = 2
    hidden_dim = 16
    comm_dim = 8
    memory_dim = 32
    n_agents = 3
    T = 8                                                # rollout length (demo)
    K1 = (n_agents - 1) * comm_dim                       # 16
    K2 = (n_agents - 1) * hidden_dim                     # 32
    input_size = K1 + K2                                 # 48

    key = jax.random.PRNGKey(0)
    k_mem, k_sent, k_recv, k_oth, k_par, k_rseq, k_oseq = jax.random.split(key, 7)

    social_memory = jax.random.normal(k_mem, (batch_size, memory_dim), jnp.float32)
    sent_messages = jax.random.normal(k_sent, (batch_size, comm_dim), jnp.float32)
    received_messages = jax.random.normal(k_recv, (batch_size, K1), jnp.float32)
    others_states = jax.random.normal(k_oth, (batch_size, K2), jnp.float32)
    received_seq = jax.random.normal(k_rseq, (T, batch_size, K1), jnp.float32)
    others_seq = jax.random.normal(k_oseq, (T, batch_size, K2), jnp.float32)

    torch_params = init_torch_style_params(k_par, input_size, memory_dim)
    w_packed, b_packed = pack_gru_params(torch_params)

    # Pure-JAX references first (kernel calls donate/alias their memory arg).
    ref = reference_gru_step(social_memory, received_messages, others_states,
                             torch_params)
    ref_final = reference_gru_rollout(social_memory, received_seq, others_seq,
                                      torch_params)
    jax.block_until_ready((ref, ref_final))

    forward_fn = jax.jit(social_relationship_tracker_forward, donate_argnums=(0,))
    rollout_fn = jax.jit(social_relationship_tracker_rollout, donate_argnums=(0,))

    # --- single-step forward (the module's forward) -------------------------
    new_memory = forward_fn(jnp.copy(social_memory), sent_messages,
                            received_messages, others_states,
                            w_packed, b_packed)
    new_memory = jax.block_until_ready(new_memory)
    assert new_memory.shape == (batch_size, memory_dim)
    assert jnp.allclose(new_memory, ref, atol=1e-4, rtol=1e-4)

    # --- recurrent rollout (one launch, one grid step for all T steps) ------
    final_memory = rollout_fn(jnp.copy(social_memory), received_seq, others_seq,
                              w_packed, b_packed)
    final_memory = jax.block_until_ready(final_memory)
    assert final_memory.shape == (batch_size, memory_dim)
    assert jnp.allclose(final_memory, ref_final, atol=1e-3, rtol=1e-3)

    print("KERNEL_OK")
</pallas_src>

<mosaic_0001>
module attributes {stable_mosaic.version = 11 : i64} {
  func.func @_gru_step_kernel(%arg0: memref<2x32xf32, #tpu.memory_space<vmem>>, %arg1: memref<2x16xf32, #tpu.memory_space<vmem>>, %arg2: memref<2x32xf32, #tpu.memory_space<vmem>>, %arg3: memref<80x128xf32, #tpu.memory_space<vmem>>, %arg4: memref<1x128xf32, #tpu.memory_space<vmem>>, %arg5: memref<2x32xf32, #tpu.memory_space<vmem>>) attributes {dimension_semantics = [], scalar_prefetch = 0 : i64, scratch_operands = 0 : i64, tpu.core_type = #tpu.core_type<tc>} {
    %c0 = arith.constant 0 : index
    %c0_0 = arith.constant 0 : index
    %0 = vector.load %arg1[%c0, %c0_0] : memref<2x16xf32, #tpu.memory_space<vmem>>, vector<2x16xf32>
    %c0_1 = arith.constant 0 : index
    %c0_2 = arith.constant 0 : index
    %1 = vector.load %arg2[%c0_1, %c0_2] : memref<2x32xf32, #tpu.memory_space<vmem>>, vector<2x32xf32>
    %c0_3 = arith.constant 0 : index
    %c0_4 = arith.constant 0 : index
    %2 = vector.load %arg0[%c0_3, %c0_4] : memref<2x32xf32, #tpu.memory_space<vmem>>, vector<2x32xf32>
    %c0_5 = arith.constant 0 : index
    %c0_6 = arith.constant 0 : index
    %3 = vector.load %arg3[%c0_5, %c0_6] : memref<80x128xf32, #tpu.memory_space<vmem>>, vector<80x128xf32>
    %c0_7 = arith.constant 0 : index
    %c0_8 = arith.constant 0 : index
    %4 = vector.load %arg4[%c0_7, %c0_8] : memref<1x128xf32, #tpu.memory_space<vmem>>, vector<1x128xf32>
    %5 = tpu.concatenate %0, %1, %2 in 1 : vector<2x16xf32>, vector<2x32xf32>, vector<2x32xf32> -> vector<2x80xf32>
    %cst = arith.constant dense<0.000000e+00> : vector<2x128xf32>
    %6 = tpu.matmul %5, %3, %cst {dimension_numbers = #tpu.dot_dimension_numbers<[1], [0], [0], [1], [0, 0, 1, 1], [], []>} : vector<2x80xf32>, vector<80x128xf32>, vector<2x128xf32> -> vector<2x128xf32>
    %7 = vector.broadcast %4 : vector<1x128xf32> to vector<2x128xf32>
    %8 = arith.addf %6, %7 : vector<2x128xf32>
    %9 = vector.extract_strided_slice %8 {offsets = [0, 0], sizes = [2, 32], strides = [1, 1]} : vector<2x128xf32> to vector<2x32xf32>
    %10 = arith.negf %9 : vector<2x32xf32>
    %11 = math.exp %10 : vector<2x32xf32>
    %cst_9 = arith.constant 1.000000e+00 : f32
    %12 = vector.broadcast %cst_9 : f32 to vector<2x32xf32>
    %13 = arith.addf %12, %11 : vector<2x32xf32>
    %14 = arith.divf %12, %13 : vector<2x32xf32>
    %15 = vector.extract_strided_slice %8 {offsets = [0, 32], sizes = [2, 32], strides = [1, 1]} : vector<2x128xf32> to vector<2x32xf32>
    %16 = arith.negf %15 : vector<2x32xf32>
    %17 = math.exp %16 : vector<2x32xf32>
    %cst_10 = arith.constant 1.000000e+00 : f32
    %18 = vector.broadcast %cst_10 : f32 to vector<2x32xf32>
    %19 = arith.addf %18, %17 : vector<2x32xf32>
    %20 = arith.divf %18, %19 : vector<2x32xf32>
    %21 = vector.extract_strided_slice %8 {offsets = [0, 64], sizes = [2, 32], strides = [1, 1]} : vector<2x128xf32> to vector<2x32xf32>
    %22 = vector.extract_strided_slice %8 {offsets = [0, 96], sizes = [2, 32], strides = [1, 1]} : vector<2x128xf32> to vector<2x32xf32>
    %23 = arith.mulf %14, %22 : vector<2x32xf32>
    %24 = arith.addf %21, %23 : vector<2x32xf32>
    %25 = math.tanh %24 : vector<2x32xf32>
    %cst_11 = arith.constant 1.000000e+00 : f32
    %26 = vector.broadcast %cst_11 : f32 to vector<2x32xf32>
    %27 = arith.subf %26, %20 : vector<2x32xf32>
    %28 = arith.mulf %27, %25 : vector<2x32xf32>
    %29 = arith.mulf %20, %2 : vector<2x32xf32>
    %30 = arith.addf %28, %29 : vector<2x32xf32>
    %c0_12 = arith.constant 0 : index
    %c0_13 = arith.constant 0 : index
    %31 = vector.load %arg5[%c0_12, %c0_13] : memref<2x32xf32, #tpu.memory_space<vmem>>, vector<2x32xf32>
    tpu.vector_store %arg5[%c0_12, %c0_13], %30 {strides = array<i32>} : memref<2x32xf32, #tpu.memory_space<vmem>>, vector<2x32xf32>,
    return
  }
}

</mosaic_0001>

<bundles_post_ra>
// kernel: social_relationship_tracker_forward.1
= control target key start
LH: loop header
LB: loop body
LE: loop exit
PB: predicated region body
PF: predicated region fallthrough
CT: control target
= control target key end

     0   :  { %10 = vsyncpa [#allocation3], 0  ;;  %s441_s0 = inlined_call_operand.hbm [shape: f32[2,32], index: 0, kind: input, shape index: {}, may-alias: {0,5}]   ;;  %s442_s1 = inlined_call_operand.vmem [shape: f32[2,16], index: 1, kind: input, shape index: {}]   ;;  %s443_s2 = inlined_call_operand.vmem [shape: f32[2,32], index: 2, kind: input, shape index: {}]   ;;  %s444_s3 = inlined_call_operand.hbm [shape: f32[80,128], index: 3, kind: input, shape index: {}]   ;;  %s445_s4 = inlined_call_operand.vmem [shape: f32[1,128], index: 4, kind: input, shape index: {}]   ;;  %s446_s5 = inlined_call_operand.hbm [shape: f32[2,32], index: 5, kind: output, shape index: {}, may-alias: {0,5}]  }
   0x1   :  { %11 = vsyncpa [#allocation6], 0 }
   0x2   :  { %12 = vsyncpa [#allocation4], 0  ;;  %s346_s18 = smov [#allocation2]   ;;  %s347_s20 = smov [#allocation5]  }
   0x3   :  { %s19_s19 = sshll.u32 %s346_s18, 4  ;;  %s32_s21 = sshll.u32 %s347_s20, 4  ;;  %s20_s19 = int_to_ptr.vmem [resolvable:$true] %s19_s19  ;;  %s389_s21 = int_to_ptr.vmem [resolvable:$true] %s32_s21 }
   0x4   :  { %s274_s24 = scalar_lea.hbm %s441_s0, 32 }
   0x5   :  { %p275_p0 = scmp.ne.s32.totalorder %s441_s0, %s274_s24  ;;  %p278_p1 = scmp.lt.u32.totalorder %s274_s24, %s441_s0 }
   0x7   :  { %p280_p2 = pnand %p278_p1, %p275_p0 }
   0x9   :  { %283 = shalt.err (!%p280_p2)
}
   0xa   :  { %s284_s29 = scalar_lea.vmem %s20_s19, 32  ;;  %p289_p4 = scmp.lt.s32.totalorder %s20_s19, %s20_s19 }
   0xb   :  { %p285_p3 = scmp.ne.s32.totalorder %s20_s19, %s284_s29  ;;  %p290_p5 = scmp.lt.s32.totalorder %s284_s29, %s284_s29 }
   0xd   :  { %p291_p6 = por %p290_p5, %p289_p4 }
   0xf   :  { %p292_p7 = pnand %p291_p6, %p285_p3 }
  0x11   :  { %295 = shalt.err (!%p292_p7)
}
  0x12   :  { %22 = dma.hbm_to_vmem [thread:$0]  %s441_s0, 32, %s20_s19, [#allocation3]  }
  0x13   :  { %s296_s9 = scalar_lea.hbm %s444_s3, 1280 }
  0x14   :  { %p297_p8 = scmp.ne.s32.totalorder %s444_s3, %s296_s9  ;;  %p300_p9 = scmp.lt.u32.totalorder %s296_s9, %s444_s3 }
  0x16   :  { %p302_p10 = pnand %p300_p9, %p297_p8 }
  0x18   :  { %305 = shalt.err (!%p302_p10)
}
  0x19   :  { %s306_s14 = scalar_lea.vmem %s389_s21, 1280  ;;  %p311_p12 = scmp.lt.s32.totalorder %s389_s21, %s389_s21 }
  0x1a   :  { %p307_p11 = scmp.ne.s32.totalorder %s389_s21, %s306_s14  ;;  %p312_p13 = scmp.lt.s32.totalorder %s306_s14, %s306_s14 }
  0x1c   :  { %p313_p0 = por %p312_p13, %p311_p12 }
  0x1e   :  { %p314_p1 = pnand %p313_p0, %p307_p11 }
  0x20   :  { %317 = shalt.err (!%p314_p1)
}
  0x21   :  { %s348_s0 = smov 128   ;;  %s349_s15 = smov 8  }
  0x22   :  { %38 = dma.hbm_to_vmem [thread:$0]  %s444_s3, 1280, %s389_s21, [#allocation6], %s348_s0, %s348_s0, %s349_s15  }
  0x23   :  { %340 = dma.done.wait [#allocation3], 32  }
  0x24   :  { %341 = vsyncadd [#allocation3], 4294967264 }
  0x25   :  { %342 = dma.done.wait [#allocation6], 1280  }
  0x26   :  { %343 = vsyncadd [#allocation6], 4294966016  ;;  %v350_v0 = vmov 0.0|0.0   ;;  %vm351_vm0 = vmmov 0   ;;  %v352_v1 = vmov 0.0   ;;  %v50_v3 = vld [vmem:[#allocation5] sm:$0xff] }
  0x27   :  { %240 = vmatprep.subr.bf16.mxu0 %v350_v0  ;;  %237 = vmatprep.mubr.msk.f32.mxu0 %vm351_vm0, %v352_v1  ;;  %v48_v2 = vld [vmem:[%s443_s2] sm:$0x3]  ;;  %s353_s20 = smov 16   ;;  %v51_v4 = vld [vmem:[#allocation5 + $0x8] sm:$0xff]  ;;  %v52_v5 = vld [vmem:[#allocation5 + $0x10] sm:$0xff]  ;;  %s354_s3 = smov 48  }
  0x28   :  { %62 = vrot.lane.b32.xlu0 %v48_v2, %s353_s20  ;;  %v53_v6 = vld [vmem:[#allocation5 + $0x18] sm:$0xff]  ;;  %v241_v8 = vpack.c.bf16 %v51_v4, %v50_v3  ;;  %v54_v10 = vld [vmem:[#allocation5 + $0x20] sm:$0xff]  ;;  %v55_v11 = vld [vmem:[#allocation5 + $0x28] sm:$0xff]  ;;  %vm69_vm1 = vcmask 130048   ;;  %vm71_vm2 = vcmask 392192   ;;  %vm79_vm3 = vcmask 654336  }
  0x29   :  { %v49_v7 = vld [vmem:[#allocation2] sm:$0x3]  ;;  %v244_v9 = vpack.c.bf16 %v53_v6, %v52_v5  ;;  %v247_v12 = vpack.c.bf16 %v55_v11, %v54_v10  ;;  %v56_v13 = vld [vmem:[#allocation5 + $0x30] sm:$0xff]  ;;  %v58_v16 = vld [vmem:[#allocation5 + $0x40] sm:$0xff]  ;;  %s355_s24 = smov 32   ;;  %s358_s25 = smov [#allocation7]  }
  0x2a   :  { %242 = vmatpush3.bf16.msra.mxu0 %v241_v8  ;;  %v57_v14 = vld [vmem:[#allocation5 + $0x38] sm:$0xff]  ;;  %v59_v17 = vld [vmem:[#allocation5 + $0x48] sm:$0xff]  ;;  %s193_s26 = sshll.u32 %s358_s25, 4  ;;  %vm185_vm4 = vcmask 254976   ;;  %s194_s26 = int_to_ptr.vmem [resolvable:$true] %s193_s26 }
  0x2b   :  { %243 = vmatprep.subr.bf16.mxu0 %v350_v0  ;;  %v250_v15 = vpack.c.bf16 %v57_v14, %v56_v13  ;;  %v253_v18 = vpack.c.bf16 %v59_v17, %v58_v16  ;;  %v47_v20 = vld [vmem:[%s442_s1] sm:$0x3]  ;;  %s356_s1 = smov 64   ;;  %s318_s27 = scalar_lea.vmem %s194_s26, 32 }
  0x2c   :  { %66 = vrot.lane.b32.xlu0 %v49_v7, %s354_s3  ;;  %v203_v24 = vld [vmem:[%s445_s4] ss:$0 sm:$0xff]  ;;  %s357_s4 = smov 96   ;;  %p319_p2 = scmp.ne.s32.totalorder %s194_s26, %s318_s27 }
  0x2d   :  { %p323_p3 = scmp.lt.s32.totalorder %s194_s26, %s194_s26  ;;  %p324_p4 = scmp.lt.s32.totalorder %s318_s27, %s318_s27 }
  0x2e   :  { %245 = vmatpush3.bf16.msra.mxu0 %v244_v9 }
  0x2f   :  { %246 = vmatprep.subr.bf16.mxu0 %v350_v0  ;;  %p325_p5 = por %p324_p4, %p323_p3 }
  0x31   :  { %p326_p6 = pnand %p325_p5, %p319_p2 }
  0x32   :  { %248 = vmatpush3.bf16.msra.mxu0 %v247_v12 }
  0x33   :  { %249 = vmatprep.subr.bf16.mxu0 %v350_v0 }
  0x36   :  { %251 = vmatpush3.bf16.msra.mxu0 %v250_v15 }
  0x37   :  { %252 = vmatprep.subr.bf16.mxu0 %v350_v0 }
  0x3a   :  { %254 = vmatpush3.bf16.msra.mxu0 %v253_v18 }
  0x9a   :  { %v63_v19 = vpop.permute.xlu0 %62 }
  0x9b   :  { %v70_v21 = vsel %vm69_vm1, %v47_v20, %v63_v19 }
  0x9e   :  { %v67_v22 = vpop.permute.xlu0 %66 }
  0x9f   :  { %v72_v23 = vsel %vm71_vm2, %v70_v21, %v67_v22 }
  0xa0   :  { %238 = vmatmul.mubr.msk.f32.vlgmr.msra.gmra.mrb[0].mxu0 %vm79_vm3, %v72_v23 }
 0x173   :  { %v149_v25 = vpop.f32.mrb[0].mxu0 }
 0x174   :  { %v150_v26 = vadd.f32 %v203_v24, %v149_v25  ;;  %v239_v27 = vpop.f32.mrb[1].mxu0 }
 0x176   :  { %160 = vrot.lane.b32.xlu1 %v150_v26, %s355_s24  ;;  %v205_v28 = vmul.f32 -1.442695, %v150_v26 }
 0x178   :  { %268 = vpow2.f32 %v205_v28 }
 0x182   :  { %v269_v29 = vpop.eup %268 }
 0x183   :  { %v156_v30 = vadd.f32 1.0, %v269_v29 }
 0x185   :  { %270 = vrcp.f32 %v156_v30 }
 0x18f   :  { %v271_v31 = vpop.eup %270 }
 0x190   :  { %v170_v38 = vsub.f32 1.0, %v271_v31 }
 0x1e8   :  { %v161_v32 = vpop.permute.xlu1 %160 }
 0x1e9   :  { %v163_v33 = vmul.f32 %v271_v31, %v161_v32 }
 0x1eb   :  { %165 = vrot.lane.b32.xlu1 %v163_v33, %s356_s1 }
 0x1ef   :  { %176 = vrot.lane.b32.xlu1 %v49_v7, %s355_s24 }
 0x25d   :  { %v166_v34 = vpop.permute.xlu1 %165 }
 0x25e   :  { %v168_v35 = vadd.f32 %v166_v34, %v150_v26 }
 0x260   :  { %272 = vtanh.f32 %v168_v35 }
 0x261   :  { %v177_v37 = vpop.permute.xlu1 %176 }
 0x262   :  { %v179_v40 = vmul.f32 %v271_v31, %v177_v37 }
 0x26a   :  { %v273_v36 = vpop.eup %272 }
 0x26b   :  { %172 = vrot.lane.b32.xlu0 %v273_v36, %s357_s4 }
 0x2dd   :  { %v173_v39 = vpop.permute.xlu0 %172 }
 0x2de   :  { %v175_v41 = vmul.f32 %v173_v39, %v170_v38 }
 0x2e0   :  { %v180_v42 = vadd.f32 %v179_v40, %v175_v41 }
 0x2e2   :  { %182 = vrot.lane.b32.xlu0 %v180_v42, %s357_s4 }
 0x354   :  { %v183_v43 = vpop.permute.xlu0 %182 }
 0x355   :  { %186 = vst.msk [vmem:[#allocation7] sm:$0x3] %vm185_vm4, %v183_v43 }
 0x356   :  { %329 = shalt.err (!%p326_p6)
}
 0x357   :  { %s330_s30 = scalar_lea.hbm %s446_s5, 32 }
 0x358   :  { %p331_p7 = scmp.ne.s32.totalorder %s446_s5, %s330_s30  ;;  %p334_p8 = scmp.lt.u32.totalorder %s330_s30, %s446_s5 }
 0x35a   :  { %p336_p9 = pnand %p334_p8, %p331_p7 }
 0x35c   :  { %339 = shalt.err (!%p336_p9)
}
 0x35d   :  { %196 = dma.vmem_to_hbm [thread:$0]  %s194_s26, 32, %s446_s5, [#allocation4]  }
 0x35e   :  { %344 = dma.done.wait [#allocation4], 32  }
 0x35f   :  { %345 = vsyncadd [#allocation4], 4294967264 }
 0x360   :  { %200 = vsyncpa [#allocation3], 1 }
 0x361   :  { %201 = vsyncpa [#allocation6], 1 }
 0x362   :  { %202 = vsyncpa [#allocation4], 1 }

</bundles_post_ra>
